<compile_context>
chip_gen: v7x
topology: tpu7x:2x2x1
jax: 0.10.0
libtpu: 0.0.40
codegen_flags: <defaults>
</compile_context>

<pallas_src>
import functools

import jax
import jax.numpy as jnp
from jax import lax
from jax.experimental import pallas as pl
from jax.experimental.pallas import tpu as pltpu

EPS = 1e-5
NEG_SLOPE = 0.2


def _basic_block_kernel(x_ref, m1_ref, m2_ref, p_ref, o_ref,
                        xpad_ref, ypad_ref, *, H, W, C):
    WC = W * C

    # --- maintain the zero halo rows (H padding). Re-zeroed every grid step
    # (2 tiny row stores per scratch) so this is megacore-safe; the interior is
    # fully overwritten below, so nothing else needs clearing.
    zrow = jnp.zeros((1, WC), jnp.float32)
    xpad_ref[0:1, :] = zrow
    xpad_ref[H + 1:H + 2, :] = zrow
    ypad_ref[0:1, :] = zrow
    ypad_ref[H + 1:H + 2, :] = zrow

    x = x_ref[0]                       # (H, W*C) lane-folded NHWC input
    xpad_ref[1:H + 1, :] = x           # lane-aligned full-width interior store

    def conv3x3(pad_ref, m_ref):
        # 3 matmuls (one per dy). The banded matrix m_ref[dy] (W*C, W*C) encodes
        # the three dx taps, the W zero padding and the Cin->Cout channel mix.
        acc = jnp.dot(pad_ref[0:H, :], m_ref[0],
                      preferred_element_type=jnp.float32)
        for dy in (1, 2):
            acc = acc + jnp.dot(pad_ref[dy:dy + H, :], m_ref[dy],
                                preferred_element_type=jnp.float32)
        return acc                     # (H, W*C), lane-folded

    def instance_norm(y):
        # Per-channel mean / biased variance over all spatial positions, computed
        # lane-dense: P[wi*C+c, wo*C+c'] = (c == c') / (H*W).
        p = p_ref[...]
        mean = jnp.dot(jnp.sum(y, axis=0, keepdims=True), p,
                       preferred_element_type=jnp.float32)        # (1, W*C)
        cent = y - mean
        var = jnp.dot(jnp.sum(cent * cent, axis=0, keepdims=True), p,
                      preferred_element_type=jnp.float32)         # (1, W*C)
        return cent * lax.rsqrt(var + EPS)

    def leaky(y):
        return jnp.where(y > 0, y, NEG_SLOPE * y)

    # conv1 -> IN -> LeakyReLU
    y1 = leaky(instance_norm(conv3x3(xpad_ref, m1_ref)))
    ypad_ref[1:H + 1, :] = y1

    # conv2 -> IN -> (+ identity) -> LeakyReLU
    y2 = instance_norm(conv3x3(ypad_ref, m2_ref))
    o_ref[0] = leaky(y2 + x)           # bypass=None -> identity residual


def _banded_weights(w, W):
    """OIHW (Co, Ci, 3, 3) -> (3, W*Ci, W*Co) banded matrices, one per dy.

    M[dy, wi*Ci+ci, wo*Co+co] = w[co, ci, dy, dx] with wi = wo + dx - 1 (else 0),
    which also realizes the width-direction zero padding.
    """
    Co, Ci = w.shape[0], w.shape[1]
    w = w.astype(jnp.float32)
    mats = []
    for dy in range(3):
        m = jnp.zeros((W * Ci, W * Co), jnp.float32)
        for dx in range(3):
            band = jnp.eye(W, k=1 - dx, dtype=jnp.float32)   # wi = wo + dx - 1
            m = m + jnp.kron(band, w[:, :, dy, dx].T)
        mats.append(m)
    return jnp.stack(mats, axis=0)


def basic_block(x_nchw, w1, w2):
    """BasicBlock forward (stride=1, bypass=None).

    x_nchw: (N, C, H, W) float32
    w1, w2: (C, C, 3, 3) float32 (OIHW, bias=False)
    returns (N, C, H, W) float32
    """
    N, Ci, H, W = x_nchw.shape
    Co = w1.shape[0]
    assert Ci == Co, "bypass=None requires inplanes == planes"
    # TODO(synk): `bypass` (an arbitrary nn.Module downsample path) and stride != 1
    # are not translated; only the default BasicBlock(..., stride=1, bypass=None)
    # forward path is implemented.
    C = Co
    WC = W * C

    # Glue: NCHW -> NHWC -> lane-folded (N, H, W*C); weights -> banded matrices;
    # P = per-channel averaging matrix for the instance-norm statistics.
    x_folded = jnp.transpose(x_nchw, (0, 2, 3, 1)).reshape(N, H, WC)
    m1 = _banded_weights(w1, W)
    m2 = _banded_weights(w2, W)
    p = jnp.tile(jnp.eye(C, dtype=jnp.float32), (W, W)) / float(H * W)

    kernel = functools.partial(_basic_block_kernel, H=H, W=W, C=C)

    out_folded = pl.pallas_call(
        kernel,
        out_shape=jax.ShapeDtypeStruct((N, H, WC), jnp.float32),
        grid_spec=pltpu.PrefetchScalarGridSpec(
            num_scalar_prefetch=0,
            grid=(N,),
            in_specs=[
                pl.BlockSpec((1, H, WC), lambda n: (n, 0, 0)),     # x (lane-folded)
                pl.BlockSpec((3, WC, WC), lambda n: (0, 0, 0)),    # conv1 bands
                pl.BlockSpec((3, WC, WC), lambda n: (0, 0, 0)),    # conv2 bands
                pl.BlockSpec((WC, WC), lambda n: (0, 0)),          # channel-avg P
            ],
            out_specs=pl.BlockSpec((1, H, WC), lambda n: (n, 0, 0)),
            scratch_shapes=[
                pltpu.VMEM((H + 2, WC), jnp.float32),   # H-padded input
                pltpu.VMEM((H + 2, WC), jnp.float32),   # H-padded intermediate
            ],
        ),
        compiler_params=pltpu.CompilerParams(
            dimension_semantics=("parallel",)),
    )(x_folded, m1, m2, p)

    return jnp.transpose(out_folded.reshape(N, H, W, C), (0, 3, 1, 2))


def _reference(x, w1, w2):
    # Pure-JAX reference (lax conv + instance norm + residual) for validation.
    def conv(x, w):
        return lax.conv_general_dilated(
            x, w, window_strides=(1, 1), padding=((1, 1), (1, 1)),
            dimension_numbers=("NCHW", "OIHW", "NCHW"),
            precision=lax.Precision.HIGHEST)

    def inorm(y):
        mean = jnp.mean(y, axis=(2, 3), keepdims=True)
        var = jnp.mean((y - mean) ** 2, axis=(2, 3), keepdims=True)
        return (y - mean) * lax.rsqrt(var + EPS)

    def lrelu(y):
        return jnp.where(y > 0, y, NEG_SLOPE * y)

    out = lrelu(inorm(conv(x, w1)))
    out = inorm(conv(out, w2))
    return lrelu(out + x)


if __name__ == "__main__":
    key = jax.random.PRNGKey(0)
    k_x, k_w1, k_w2 = jax.random.split(key, 3)

    # BasicBlock with bypass=None implies inplanes == planes.
    N, C, H, W = 2, 8, 16, 16
    x = jax.random.normal(k_x, (N, C, H, W), dtype=jnp.float32)
    w1 = jax.random.normal(k_w1, (C, C, 3, 3), dtype=jnp.float32) * 0.1
    w2 = jax.random.normal(k_w2, (C, C, 3, 3), dtype=jnp.float32) * 0.1

    out = jax.block_until_ready(basic_block(x, w1, w2))
    ref = jax.block_until_ready(_reference(x, w1, w2))

    assert out.shape == (N, C, H, W), out.shape
    max_err = float(jnp.max(jnp.abs(out - ref)))
    assert jnp.allclose(out, ref, atol=2e-4, rtol=2e-4), max_err

    print("KERNEL_OK")
</pallas_src>

<mosaic_0001>
module attributes {stable_mosaic.version = 11 : i64} {
  func.func @_basic_block_kernel(%arg0: i32, %arg1: memref<1x16x128xf32, #tpu.memory_space<vmem>>, %arg2: memref<3x128x128xf32, #tpu.memory_space<vmem>>, %arg3: memref<3x128x128xf32, #tpu.memory_space<vmem>>, %arg4: memref<128x128xf32, #tpu.memory_space<vmem>>, %arg5: memref<1x16x128xf32, #tpu.memory_space<vmem>>, %arg6: memref<18x128xf32, #tpu.memory_space<vmem>>, %arg7: memref<18x128xf32, #tpu.memory_space<vmem>>) attributes {dimension_semantics = [#tpu.dimension_semantics<parallel>], iteration_bounds = array<i64: 2>, scalar_prefetch = 0 : i64, scratch_operands = 2 : i64, tpu.core_type = #tpu.core_type<tc>, window_params = [{transform_indices = @transform_0, window_bounds = array<i64: 1, 16, 128>}, {pipeline_mode = #tpu.pipeline_mode<synchronous>, transform_indices = @transform_1, window_bounds = array<i64: 3, 128, 128>}, {pipeline_mode = #tpu.pipeline_mode<synchronous>, transform_indices = @transform_2, window_bounds = array<i64: 3, 128, 128>}, {pipeline_mode = #tpu.pipeline_mode<synchronous>, transform_indices = @transform_3, window_bounds = array<i64: 128, 128>}, {transform_indices = @transform_4, window_bounds = array<i64: 1, 16, 128>}]} {
    %cst = arith.constant 0.000000e+00 : f32
    %0 = vector.broadcast %cst : f32 to vector<1x128xf32>
    %c0 = arith.constant 0 : index
    %c0_0 = arith.constant 0 : index
    %1 = vector.load %arg6[%c0, %c0_0] : memref<18x128xf32, #tpu.memory_space<vmem>>, vector<1x128xf32>
    tpu.vector_store %arg6[%c0, %c0_0], %0 {strides = array<i32>} : memref<18x128xf32, #tpu.memory_space<vmem>>, vector<1x128xf32>,
    %c17 = arith.constant 17 : index
    %c0_1 = arith.constant 0 : index
    %2 = vector.load %arg6[%c17, %c0_1] : memref<18x128xf32, #tpu.memory_space<vmem>>, vector<1x128xf32>
    tpu.vector_store %arg6[%c17, %c0_1], %0 {strides = array<i32>} : memref<18x128xf32, #tpu.memory_space<vmem>>, vector<1x128xf32>,
    %c0_2 = arith.constant 0 : index
    %c0_3 = arith.constant 0 : index
    %3 = vector.load %arg7[%c0_2, %c0_3] : memref<18x128xf32, #tpu.memory_space<vmem>>, vector<1x128xf32>
    tpu.vector_store %arg7[%c0_2, %c0_3], %0 {strides = array<i32>} : memref<18x128xf32, #tpu.memory_space<vmem>>, vector<1x128xf32>,
    %c17_4 = arith.constant 17 : index
    %c0_5 = arith.constant 0 : index
    %4 = vector.load %arg7[%c17_4, %c0_5] : memref<18x128xf32, #tpu.memory_space<vmem>>, vector<1x128xf32>
    tpu.vector_store %arg7[%c17_4, %c0_5], %0 {strides = array<i32>} : memref<18x128xf32, #tpu.memory_space<vmem>>, vector<1x128xf32>,
    %c0_6 = arith.constant 0 : index
    %c0_7 = arith.constant 0 : index
    %c0_8 = arith.constant 0 : index
    %5 = vector.load %arg1[%c0_6, %c0_7, %c0_8] : memref<1x16x128xf32, #tpu.memory_space<vmem>>, vector<1x16x128xf32>
    %6 = vector.shape_cast %5 : vector<1x16x128xf32> to vector<16x128xf32>
    %c1 = arith.constant 1 : index
    %c0_9 = arith.constant 0 : index
    %7 = vector.load %arg6[%c1, %c0_9] : memref<18x128xf32, #tpu.memory_space<vmem>>, vector<16x128xf32>
    tpu.vector_store %arg6[%c1, %c0_9], %6 {strides = array<i32>} : memref<18x128xf32, #tpu.memory_space<vmem>>, vector<16x128xf32>,
    %c0_10 = arith.constant 0 : index
    %c0_11 = arith.constant 0 : index
    %8 = vector.load %arg6[%c0_10, %c0_11] : memref<18x128xf32, #tpu.memory_space<vmem>>, vector<16x128xf32>
    %c0_12 = arith.constant 0 : index
    %c0_13 = arith.constant 0 : index
    %c0_14 = arith.constant 0 : index
    %9 = vector.load %arg2[%c0_12, %c0_13, %c0_14] : memref<3x128x128xf32, #tpu.memory_space<vmem>>, vector<1x128x128xf32>
    %10 = vector.shape_cast %9 : vector<1x128x128xf32> to vector<128x128xf32>
    %cst_15 = arith.constant dense<0.000000e+00> : vector<16x128xf32>
    %11 = tpu.matmul %8, %10, %cst_15 {dimension_numbers = #tpu.dot_dimension_numbers<[1], [0], [0], [1], [0, 0, 1, 1], [], []>} : vector<16x128xf32>, vector<128x128xf32>, vector<16x128xf32> -> vector<16x128xf32>
    %c1_16 = arith.constant 1 : index
    %c0_17 = arith.constant 0 : index
    %12 = vector.load %arg6[%c1_16, %c0_17] : memref<18x128xf32, #tpu.memory_space<vmem>>, vector<16x128xf32>
    %c1_18 = arith.constant 1 : index
    %c0_19 = arith.constant 0 : index
    %c0_20 = arith.constant 0 : index
    %13 = vector.load %arg2[%c1_18, %c0_19, %c0_20] : memref<3x128x128xf32, #tpu.memory_space<vmem>>, vector<1x128x128xf32>
    %14 = vector.shape_cast %13 : vector<1x128x128xf32> to vector<128x128xf32>
    %cst_21 = arith.constant dense<0.000000e+00> : vector<16x128xf32>
    %15 = tpu.matmul %12, %14, %cst_21 {dimension_numbers = #tpu.dot_dimension_numbers<[1], [0], [0], [1], [0, 0, 1, 1], [], []>} : vector<16x128xf32>, vector<128x128xf32>, vector<16x128xf32> -> vector<16x128xf32>
    %16 = arith.addf %11, %15 : vector<16x128xf32>
    %c2 = arith.constant 2 : index
    %c0_22 = arith.constant 0 : index
    %17 = vector.load %arg6[%c2, %c0_22] : memref<18x128xf32, #tpu.memory_space<vmem>>, vector<16x128xf32>
    %c2_23 = arith.constant 2 : index
    %c0_24 = arith.constant 0 : index
    %c0_25 = arith.constant 0 : index
    %18 = vector.load %arg2[%c2_23, %c0_24, %c0_25] : memref<3x128x128xf32, #tpu.memory_space<vmem>>, vector<1x128x128xf32>
    %19 = vector.shape_cast %18 : vector<1x128x128xf32> to vector<128x128xf32>
    %cst_26 = arith.constant dense<0.000000e+00> : vector<16x128xf32>
    %20 = tpu.matmul %17, %19, %cst_26 {dimension_numbers = #tpu.dot_dimension_numbers<[1], [0], [0], [1], [0, 0, 1, 1], [], []>} : vector<16x128xf32>, vector<128x128xf32>, vector<16x128xf32> -> vector<16x128xf32>
    %21 = arith.addf %16, %20 : vector<16x128xf32>
    %c0_27 = arith.constant 0 : index
    %c0_28 = arith.constant 0 : index
    %22 = vector.load %arg4[%c0_27, %c0_28] : memref<128x128xf32, #tpu.memory_space<vmem>>, vector<128x128xf32>
    %cst_29 = arith.constant dense<0.000000e+00> : vector<128xf32>
    %23 = vector.multi_reduction <add>, %21, %cst_29 [0] : vector<16x128xf32> to vector<128xf32>
    %24 = vector.shape_cast %23 : vector<128xf32> to vector<1x128xf32>
    %cst_30 = arith.constant dense<0.000000e+00> : vector<1x128xf32>
    %25 = tpu.matmul %24, %22, %cst_30 {dimension_numbers = #tpu.dot_dimension_numbers<[1], [0], [0], [1], [0, 0, 1, 1], [], []>} : vector<1x128xf32>, vector<128x128xf32>, vector<1x128xf32> -> vector<1x128xf32>
    %26 = vector.broadcast %25 : vector<1x128xf32> to vector<16x128xf32>
    %27 = arith.subf %21, %26 : vector<16x128xf32>
    %28 = arith.mulf %27, %27 : vector<16x128xf32>
    %cst_31 = arith.constant dense<0.000000e+00> : vector<128xf32>
    %29 = vector.multi_reduction <add>, %28, %cst_31 [0] : vector<16x128xf32> to vector<128xf32>
    %30 = vector.shape_cast %29 : vector<128xf32> to vector<1x128xf32>
    %cst_32 = arith.constant dense<0.000000e+00> : vector<1x128xf32>
    %31 = tpu.matmul %30, %22, %cst_32 {dimension_numbers = #tpu.dot_dimension_numbers<[1], [0], [0], [1], [0, 0, 1, 1], [], []>} : vector<1x128xf32>, vector<128x128xf32>, vector<1x128xf32> -> vector<1x128xf32>
    %cst_33 = arith.constant 9.99999974E-6 : f32
    %32 = vector.broadcast %cst_33 : f32 to vector<1x128xf32>
    %33 = arith.addf %31, %32 : vector<1x128xf32>
    %34 = math.rsqrt %33 : vector<1x128xf32>
    %35 = vector.broadcast %34 : vector<1x128xf32> to vector<16x128xf32>
    %36 = arith.mulf %27, %35 : vector<16x128xf32>
    %cst_34 = arith.constant 0.000000e+00 : f32
    %37 = vector.broadcast %cst_34 : f32 to vector<16x128xf32>
    %38 = arith.cmpf ogt, %36, %37 : vector<16x128xf32>
    %cst_35 = arith.constant 2.000000e-01 : f32
    %39 = vector.broadcast %cst_35 : f32 to vector<16x128xf32>
    %40 = arith.mulf %39, %36 : vector<16x128xf32>
    %41 = arith.select %38, %36, %40 : vector<16x128xi1>, vector<16x128xf32>
    %c1_36 = arith.constant 1 : index
    %c0_37 = arith.constant 0 : index
    %42 = vector.load %arg7[%c1_36, %c0_37] : memref<18x128xf32, #tpu.memory_space<vmem>>, vector<16x128xf32>
    tpu.vector_store %arg7[%c1_36, %c0_37], %41 {strides = array<i32>} : memref<18x128xf32, #tpu.memory_space<vmem>>, vector<16x128xf32>,
    %c0_38 = arith.constant 0 : index
    %c0_39 = arith.constant 0 : index
    %43 = vector.load %arg7[%c0_38, %c0_39] : memref<18x128xf32, #tpu.memory_space<vmem>>, vector<16x128xf32>
    %c0_40 = arith.constant 0 : index
    %c0_41 = arith.constant 0 : index
    %c0_42 = arith.constant 0 : index
    %44 = vector.load %arg3[%c0_40, %c0_41, %c0_42] : memref<3x128x128xf32, #tpu.memory_space<vmem>>, vector<1x128x128xf32>
    %45 = vector.shape_cast %44 : vector<1x128x128xf32> to vector<128x128xf32>
    %cst_43 = arith.constant dense<0.000000e+00> : vector<16x128xf32>
    %46 = tpu.matmul %43, %45, %cst_43 {dimension_numbers = #tpu.dot_dimension_numbers<[1], [0], [0], [1], [0, 0, 1, 1], [], []>} : vector<16x128xf32>, vector<128x128xf32>, vector<16x128xf32> -> vector<16x128xf32>
    %c1_44 = arith.constant 1 : index
    %c0_45 = arith.constant 0 : index
    %47 = vector.load %arg7[%c1_44, %c0_45] : memref<18x128xf32, #tpu.memory_space<vmem>>, vector<16x128xf32>
    %c1_46 = arith.constant 1 : index
    %c0_47 = arith.constant 0 : index
    %c0_48 = arith.constant 0 : index
    %48 = vector.load %arg3[%c1_46, %c0_47, %c0_48] : memref<3x128x128xf32, #tpu.memory_space<vmem>>, vector<1x128x128xf32>
    %49 = vector.shape_cast %48 : vector<1x128x128xf32> to vector<128x128xf32>
    %cst_49 = arith.constant dense<0.000000e+00> : vector<16x128xf32>
    %50 = tpu.matmul %47, %49, %cst_49 {dimension_numbers = #tpu.dot_dimension_numbers<[1], [0], [0], [1], [0, 0, 1, 1], [], []>} : vector<16x128xf32>, vector<128x128xf32>, vector<16x128xf32> -> vector<16x128xf32>
    %51 = arith.addf %46, %50 : vector<16x128xf32>
    %c2_50 = arith.constant 2 : index
    %c0_51 = arith.constant 0 : index
    %52 = vector.load %arg7[%c2_50, %c0_51] : memref<18x128xf32, #tpu.memory_space<vmem>>, vector<16x128xf32>
    %c2_52 = arith.constant 2 : index
    %c0_53 = arith.constant 0 : index
    %c0_54 = arith.constant 0 : index
    %53 = vector.load %arg3[%c2_52, %c0_53, %c0_54] : memref<3x128x128xf32, #tpu.memory_space<vmem>>, vector<1x128x128xf32>
    %54 = vector.shape_cast %53 : vector<1x128x128xf32> to vector<128x128xf32>
    %cst_55 = arith.constant dense<0.000000e+00> : vector<16x128xf32>
    %55 = tpu.matmul %52, %54, %cst_55 {dimension_numbers = #tpu.dot_dimension_numbers<[1], [0], [0], [1], [0, 0, 1, 1], [], []>} : vector<16x128xf32>, vector<128x128xf32>, vector<16x128xf32> -> vector<16x128xf32>
    %56 = arith.addf %51, %55 : vector<16x128xf32>
    %c0_56 = arith.constant 0 : index
    %c0_57 = arith.constant 0 : index
    %57 = vector.load %arg4[%c0_56, %c0_57] : memref<128x128xf32, #tpu.memory_space<vmem>>, vector<128x128xf32>
    %cst_58 = arith.constant dense<0.000000e+00> : vector<128xf32>
    %58 = vector.multi_reduction <add>, %56, %cst_58 [0] : vector<16x128xf32> to vector<128xf32>
    %59 = vector.shape_cast %58 : vector<128xf32> to vector<1x128xf32>
    %cst_59 = arith.constant dense<0.000000e+00> : vector<1x128xf32>
    %60 = tpu.matmul %59, %57, %cst_59 {dimension_numbers = #tpu.dot_dimension_numbers<[1], [0], [0], [1], [0, 0, 1, 1], [], []>} : vector<1x128xf32>, vector<128x128xf32>, vector<1x128xf32> -> vector<1x128xf32>
    %61 = vector.broadcast %60 : vector<1x128xf32> to vector<16x128xf32>
    %62 = arith.subf %56, %61 : vector<16x128xf32>
    %63 = arith.mulf %62, %62 : vector<16x128xf32>
    %cst_60 = arith.constant dense<0.000000e+00> : vector<128xf32>
    %64 = vector.multi_reduction <add>, %63, %cst_60 [0] : vector<16x128xf32> to vector<128xf32>
    %65 = vector.shape_cast %64 : vector<128xf32> to vector<1x128xf32>
    %cst_61 = arith.constant dense<0.000000e+00> : vector<1x128xf32>
    %66 = tpu.matmul %65, %57, %cst_61 {dimension_numbers = #tpu.dot_dimension_numbers<[1], [0], [0], [1], [0, 0, 1, 1], [], []>} : vector<1x128xf32>, vector<128x128xf32>, vector<1x128xf32> -> vector<1x128xf32>
    %cst_62 = arith.constant 9.99999974E-6 : f32
    %67 = vector.broadcast %cst_62 : f32 to vector<1x128xf32>
    %68 = arith.addf %66, %67 : vector<1x128xf32>
    %69 = math.rsqrt %68 : vector<1x128xf32>
    %70 = vector.broadcast %69 : vector<1x128xf32> to vector<16x128xf32>
    %71 = arith.mulf %62, %70 : vector<16x128xf32>
    %72 = arith.addf %71, %6 : vector<16x128xf32>
    %cst_63 = arith.constant 0.000000e+00 : f32
    %73 = vector.broadcast %cst_63 : f32 to vector<16x128xf32>
    %74 = arith.cmpf ogt, %72, %73 : vector<16x128xf32>
    %cst_64 = arith.constant 2.000000e-01 : f32
    %75 = vector.broadcast %cst_64 : f32 to vector<16x128xf32>
    %76 = arith.mulf %75, %72 : vector<16x128xf32>
    %77 = arith.select %74, %72, %76 : vector<16x128xi1>, vector<16x128xf32>
    %c0_65 = arith.constant 0 : index
    %c0_66 = arith.constant 0 : index
    %c0_67 = arith.constant 0 : index
    %78 = vector.load %arg5[%c0_65, %c0_66, %c0_67] : memref<1x16x128xf32, #tpu.memory_space<vmem>>, vector<1x16x128xf32>
    %79 = vector.shape_cast %78 : vector<1x16x128xf32> to vector<16x128xf32>
    %80 = vector.shape_cast %77 : vector<16x128xf32> to vector<1x16x128xf32>
    tpu.vector_store %arg5[%c0_65, %c0_66, %c0_67], %80 {strides = array<i32>} : memref<1x16x128xf32, #tpu.memory_space<vmem>>, vector<1x16x128xf32>,
    return
  }
  func.func @transform_0(%arg0: i32) -> (i32, i32, i32) {
    %c0_i32 = arith.constant 0 : i32
    %c0_i32_0 = arith.constant 0 : i32
    %c0_i32_1 = arith.constant 0 : i32
    return %arg0, %c0_i32, %c0_i32_0 : i32, i32, i32
  }
  func.func @transform_1(%arg0: i32) -> (i32, i32, i32) {
    %c0_i32 = arith.constant 0 : i32
    %c0_i32_0 = arith.constant 0 : i32
    %c0_i32_1 = arith.constant 0 : i32
    %c0_i32_2 = arith.constant 0 : i32
    return %c0_i32, %c0_i32_0, %c0_i32_1 : i32, i32, i32
  }
  func.func @transform_2(%arg0: i32) -> (i32, i32, i32) {
    %c0_i32 = arith.constant 0 : i32
    %c0_i32_0 = arith.constant 0 : i32
    %c0_i32_1 = arith.constant 0 : i32
    %c0_i32_2 = arith.constant 0 : i32
    return %c0_i32, %c0_i32_0, %c0_i32_1 : i32, i32, i32
  }
  func.func @transform_3(%arg0: i32) -> (i32, i32) {
    %c0_i32 = arith.constant 0 : i32
    %c0_i32_0 = arith.constant 0 : i32
    %c0_i32_1 = arith.constant 0 : i32
    return %c0_i32, %c0_i32_0 : i32, i32
  }
  func.func @transform_4(%arg0: i32) -> (i32, i32, i32) {
    %c0_i32 = arith.constant 0 : i32
    %c0_i32_0 = arith.constant 0 : i32
    %c0_i32_1 = arith.constant 0 : i32
    return %arg0, %c0_i32, %c0_i32_0 : i32, i32, i32
  }
}

</mosaic_0001>

<bundles_post_ra>
// kernel: tpu_custom_call.1
= control target key start
LH: loop header
LB: loop body
LE: loop exit
PB: predicated region body
PF: predicated region fallthrough
CT: control target
= control target key end

     0   :  { %9 = vsyncpa [#allocation5], 0  ;;  %s2884_s0 = inlined_call_operand.hbm [shape: f32[2,16,128], index: 0, kind: input, shape index: {}]   ;;  %s2885_s1 = inlined_call_operand.hbm [shape: f32[3,128,128], index: 1, kind: input, shape index: {}]   ;;  %s2886_s2 = inlined_call_operand.hbm [shape: f32[3,128,128], index: 2, kind: input, shape index: {}]   ;;  %s2887_s3 = inlined_call_operand.hbm [shape: f32[128,128], index: 3, kind: input, shape index: {}]   ;;  %s2888_s4 = inlined_call_operand.hbm [shape: f32[2,16,128], index: 4, kind: output, shape index: {}]  }
   0x1   :  { %11 = vsyncpa [#allocation5 + $0x1], 0 }
   0x2   :  { %12 = vsyncpa [#allocation8], 0 }
   0x3   :  { %13 = vsyncpa [#allocation11], 0 }
   0x4   :  { %14 = vsyncpa [#allocation6], 0 }
   0x5   :  { %16 = vsyncpa [#allocation6 + $0x1], 0  ;;  %s2497_s15 = smov 0   ;;  %s2499_s16 = smov 0  }
   0x6   :  { %s2501_s17 = smov 0   ;;  %s2503_s18 = smov 0  }
   0x7 LB: > { %s2518_s19 = sadd.s32 4294967295, %s2458_s18   ;;  %s1338_s20 = sadd.s32 4294967294, %s2458_s18   ;;  %s2458_s18 = sphi %s2503_s18, %s2911_s18   ;;  %s2454_s17 = sphi %s2501_s17, %s2910_s17   ;;  %s2450_s16 = sphi %s2499_s16, %s2909_s16   ;;  %s2446_s15 = sphi %s2497_s15, %s2908_s15  }
   0x8   : > { %p42_p0 = scmp.ne.s32.totalorder %s2450_s16, %s2446_s15  ;;  %p2889_p1 = scmp.eq.s32.totalorder %s2518_s19, 0 }
   0x9   : > { %p135_p3 = scmp.eq.s32.totalorder %s1338_s20, 1  ;;  %p1339_p5 = scmp.ge.s32.totalorder %s2458_s18, 1 }
   0xa   : > { %p2527_p4 = por %p2889_p1, %p42_p0  ;;  %p142_p7 = scmp.lt.s32.totalorder %s2458_s18, 3 }
   0xb   : > { %p2532_p6 = por %p135_p3, %p42_p0  ;;  %s2460_s24 = smov [#allocation7]  }
   0xc   : > { %s2892_s21 = scalar_select %p2527_p4, 1, 0 }
   0xd   : > { %s2893_s22 = scalar_select %p2532_p6, 1, 0 }
   0xe   : > { %p2537_p8 = pnand %p1339_p5, %p142_p7  ;;  %s154_s25 = sshll.u32 %s2460_s24, 4  ;;  %s2541_s25 = int_to_ptr.vmem [resolvable:$true] %s154_s25 }
   0xf   : > { %s2461_s27 = smov [#allocation9]   ;;  %s2462_s29 = smov [#allocation10]  }
  0x10   : > { %s2894_s23 = scalar_select %p2537_p8, 1, 0 }
  0x11   : > { %p2198_p9 = pneg %p2537_p8  ;;  %s167_s28 = sshll.u32 %s2461_s27, 4  ;;  %s2552_s28 = int_to_ptr.vmem [resolvable:$true] %s167_s28 }
  0x12   : > { %s2554_s30 = sshll.u32 %s2462_s29, 4  ;;  %s2270_s7 = scalar_lea.hbm %s2885_s1, 6144  ;;  %s181_s30 = int_to_ptr.vmem [resolvable:$true] %s2554_s30 }
  0x13   : > { %p2548_p11 = pnand %p2198_p9, %p2889_p1  ;;  %p2271_p12 = scmp.ne.s32.totalorder %s2885_s1, %s2270_s7 }
  0x14   : > { %p2277_p5 = scmp.lt.u32.totalorder %s2270_s7, %s2885_s1 }
  0x15   : > { %p2564_p13 = pneg %p2548_p11 }
  0x17   : > { %p2273_p0 = pnand %p2564_p13, %p2271_p12 }
  0x19   : > { %p2274_p3 = pneg %p2273_p0 }
  0x1b   : > { %p2279_p7 = pnand %p2277_p5, %p2274_p3 }
  0x1d   : > { %2282 = shalt.err (!%p2279_p7)
}
  0x1e   : > { %s2283_s13 = scalar_lea.vmem %s2541_s25, 6144  ;;  %p2291_p2 = scmp.lt.s32.totalorder %s2541_s25, %s2541_s25 }
  0x1f   : > { %p2284_p9 = scmp.ne.s32.totalorder %s2541_s25, %s2283_s13  ;;  %p2292_p6 = scmp.lt.s32.totalorder %s2283_s13, %s2283_s13 }
  0x21   : > { %p2286_p10 = pnand %p2284_p9, %p2564_p13  ;;  %p2293_p12 = por %p2292_p6, %p2291_p2 }
  0x23   : > { %p2287_p1 = pneg %p2286_p10 }
  0x25   : > { %p2294_p0 = pnand %p2293_p12, %p2287_p1 }
  0x27   : > { %2297 = shalt.err (!%p2294_p0)
}
  0x28   : > { %s2463_s14 = smov 128   ;;  %s2464_s20 = smov 8  }
  0x29   : > { %2201 = dma.hbm_to_vmem [thread:$0]  (!%p2548_p11), %s2885_s1, 6144, %s2541_s25, [#allocation8], %s2463_s14, %s2463_s14, %s2464_s20  }
  0x2a   : > { %s2298_s6 = scalar_lea.hbm %s2886_s2, 6144 }
  0x2b   : > { %p2299_p1 = scmp.ne.s32.totalorder %s2886_s2, %s2298_s6  ;;  %p2305_p10 = scmp.lt.u32.totalorder %s2298_s6, %s2886_s2 }
  0x2d   : > { %p2301_p2 = pnand %p2299_p1, %p2564_p13 }
  0x2f   : > { %p2302_p6 = pneg %p2301_p2 }
  0x31   : > { %p2307_p3 = pnand %p2305_p10, %p2302_p6 }
  0x33   : > { %2310 = shalt.err (!%p2307_p3)
}
  0x34   : > { %s2311_s25 = scalar_lea.vmem %s2552_s28, 6144  ;;  %p2319_p12 = scmp.lt.s32.totalorder %s2552_s28, %s2552_s28 }
  0x35   : > { %p2312_p5 = scmp.ne.s32.totalorder %s2552_s28, %s2311_s25  ;;  %p2320_p0 = scmp.lt.s32.totalorder %s2311_s25, %s2311_s25 }
  0x37   : > { %p2314_p7 = pnand %p2312_p5, %p2564_p13  ;;  %p2321_p1 = por %p2320_p0, %p2319_p12 }
  0x39   : > { %p2315_p9 = pneg %p2314_p7 }
  0x3b   : > { %p2322_p2 = pnand %p2321_p1, %p2315_p9 }
  0x3d   : > { %2325 = shalt.err (!%p2322_p2)
}
  0x3e   : > { %2204 = dma.hbm_to_vmem [thread:$0]  (!%p2548_p11), %s2886_s2, 6144, %s2552_s28, [#allocation8], %s2463_s14, %s2463_s14, %s2464_s20  }
  0x3f   : > { %s2326_s29 = scalar_lea.hbm %s2887_s3, 2048 }
  0x40   : > { %p2327_p6 = scmp.ne.s32.totalorder %s2887_s3, %s2326_s29  ;;  %p2333_p5 = scmp.lt.u32.totalorder %s2326_s29, %s2887_s3 }
  0x42   : > { %p2329_p10 = pnand %p2327_p6, %p2564_p13 }
  0x44   : > { %p2330_p3 = pneg %p2329_p10 }
  0x46   : > { %p2335_p7 = pnand %p2333_p5, %p2330_p3 }
  0x48   : > { %2338 = shalt.err (!%p2335_p7)
}
  0x49   : > { %s2339_s9 = scalar_lea.vmem %s181_s30, 2048  ;;  %p2347_p1 = scmp.lt.s32.totalorder %s181_s30, %s181_s30 }
  0x4a   : > { %p2340_p9 = scmp.ne.s32.totalorder %s181_s30, %s2339_s9  ;;  %p2348_p2 = scmp.lt.s32.totalorder %s2339_s9, %s2339_s9 }
  0x4c   : > { %p2342_p12 = pnand %p2340_p9, %p2564_p13  ;;  %p2349_p4 = por %p2348_p2, %p2347_p1 }
  0x4e   : > { %p2343_p0 = pneg %p2342_p12 }
  0x50   : > { %p2350_p8 = pnand %p2349_p4, %p2343_p0 }
  0x52   : > { %2353 = shalt.err (!%p2350_p8)
}
  0x53   : > { %2207 = dma.hbm_to_vmem [thread:$0]  (!%p2548_p11), %s2887_s3, 2048, %s181_s30, [#allocation11], %s2463_s14, %s2463_s14, %s2464_s20  }
  0x54   : > { %s2637_s10 = sadd.s32 1, %s2458_s18   ;;  %s29_s25 = sadd.s32 1, %s2454_s17 }
  0x55   : > { %s26_s26 = ssub.s32 %s2458_s18, %s2637_s10  ;;  %p36_p8 = scmp.ne.s32.totalorder %s2454_s17, %s2450_s16 }
  0x56   : > { %p27_p4 = scmp.eq.s32.totalorder %s26_s26, 0  ;;  %p37_p13 = scmp.eq.s32.totalorder %s2458_s18, 0 }
  0x57   : > { %p2219_p6 = scmp.lt.s32.totalorder %s2458_s18, 2  ;;  %p2897_p3 = scmp.eq.s32.totalorder %s2518_s19, 1 }
  0x58   : > { %s2647_s12 = scalar_select %p27_p4, %s2454_s17, %s29_s25  }
  0x59   : > { %p38_p10 = por %p37_p13, %p36_p8  ;;  %p2651_p5 = por %p2897_p3, %p36_p8 }
  0x5a   : > { %s194_s24 = sand.u32 1, %s2454_s17   ;;  %s1358_s27 = sshll.u32 %s2458_s18, 8 }
  0x5b   : > { %s1344_s30 = sshll.u32 %s194_s24, 4  ;;  %s2660_s6 = scalar_lea.hbm %s2884_s0, %s1358_s27 }
  0x5c   : > { %s198_s7 = scalar_lea.vmem [#allocation4], %s1344_s30  ;;  %p2662_p11 = pnand %p2219_p6, %p38_p10 }
  0x5d   : > { %s205_s8 = sshll.u32 %s198_s7, 4  ;;  %s2668_s28 = scalar_lea.sflag [#allocation5], %s194_s24  ;;  %s2666_s8 = int_to_ptr.vmem [resolvable:$true] %s205_s8 }
  0x5e   : > { %s2354_s11 = scalar_lea.hbm %s2660_s6, 256  ;;  %p2356_p9 = pneg %p2662_p11 }
  0x5f   : > { %p2355_p7 = scmp.ne.s32.totalorder %s2660_s6, %s2354_s11  ;;  %s2359_s27 = scalar_lea.hbm %s2884_s0, 512 }
  0x60   : > { %p2360_p1 = scmp.lt.u32.totalorder %s2660_s6, %s2884_s0  ;;  %p2361_p2 = scmp.lt.u32.totalorder %s2359_s27, %s2354_s11 }
  0x61   : > { %p2357_p12 = pnand %p2356_p9, %p2355_p7  ;;  %p2363_p8 = scmp.lt.u32.totalorder %s2354_s11, %s2660_s6 }
  0x62   : > { %p2362_p4 = por %p2361_p2, %p2360_p1 }
  0x63   : > { %p2358_p0 = pneg %p2357_p12 }
  0x64   : > { %p2364_p13 = por %p2363_p8, %p2362_p4 }
  0x66   : > { %p2365_p6 = pnand %p2364_p13, %p2358_p0 }
  0x68   : > { %2368 = shalt.err (!%p2365_p6)
}
  0x69   : > { %s2369_s24 = scalar_lea.vmem %s2666_s8, 256  ;;  %s2465_s5 = smov [#allocation4]  }
  0x6a   : > { %p2370_p10 = scmp.ne.s32.totalorder %s2666_s8, %s2369_s24  ;;  %s2374_s7 = sshll.u32 %s2465_s5, 4  ;;  %s2375_s7 = int_to_ptr.vmem [resolvable:$false] %s2374_s7 }
  0x6b   : > { %s2376_s26 = scalar_lea.vmem %s2375_s7, 512  ;;  %p2377_p12 = scmp.lt.s32.totalorder %s2666_s8, %s2375_s7 }
  0x6c   : > { %p2372_p3 = pnand %p2370_p10, %p2356_p9  ;;  %p2378_p1 = scmp.lt.s32.totalorder %s2376_s26, %s2369_s24 }
  0x6e   : > { %p2373_p7 = pneg %p2372_p3  ;;  %p2379_p2 = por %p2378_p1, %p2377_p12 }
  0x70   : > { %p2380_p4 = pnand %p2379_p2, %p2373_p7 }
  0x72   : > { %2383 = shalt.err (!%p2380_p4)
}
  0x73   : > { %2211 = dma.hbm_to_vmem [thread:$0]  (!%p2662_p11), %s2660_s6, 256, %s2666_s8, %s2668_s28, %s2463_s14, %s2463_s14, %s2464_s20  }
  0x74   : > { %p2900_p9 = scmp.ne.s32.totalorder %s2894_s23, 0 }
  0x75   : > { %s2702_s11 = sand.u32 (!%p2900_p9), 1, %s2450_s16   ;;  %p2901_p0 = scmp.ne.s32.totalorder (!%p2900_p9), %s2892_s21, 0 }
  0x76   : > { %217 = sbr.rel (%p2900_p9) target bundleno = 1696 (0x6a0), region = 36  ;;  %s1348_s25 = sshll.u32 (!%p2900_p9), %s2702_s11, 4 }
  0x77   : > { %s220_s27 = scalar_lea.sflag (!%p2900_p9), [#allocation5], %s2702_s11  ;;  %s2708_s9 = scalar_lea.vmem (!%p2900_p9), [#allocation4], %s1348_s25 }
  0x7d   : > { %2429 = dma.done.wait (%p2901_p0), %s220_s27, 256  }
  0x7e   : > { %2431 = vsyncadd (%p2901_p0), %s220_s27, 4294967040  ;;  %p2902_p11 = scmp.eq.s32.totalorder %s2518_s19, 0 }
  0x80   : > { %2433 = dma.done.wait (%p2902_p11), [#allocation8], 12288   ;;  %p2903_p8 = pmov %p2902_p11 }
  0x82   : > { %2435 = vsyncadd (%p2903_p8), [#allocation8], 4294955008  ;;  %p2904_p13 = pmov %p2903_p8 }
  0x83   : > { %p2905_p6 = pmov %p2903_p8 }
  0x84   : > { %2437 = dma.done.wait (%p2904_p13), [#allocation11], 2048  }
  0x85   : > { %2439 = vsyncadd (%p2905_p6), [#allocation11], 4294965248  ;;  %v2466_v0 = vmov 0.0   ;;  %v2467_v1 = vmov 0.0|0.0   ;;  %v289_v2 = vld [vmem:[#allocation7 + $0x80] sm:$0xff]  ;;  %v290_v3 = vld [vmem:[#allocation7 + $0x88] sm:$0xff] }
  0x86   : > { %260 = vst [vmem:[#allocation2] sm:$0x1] %v2466_v0  ;;  %261 = vst [vmem:[#allocation2 + $0x11] sm:$0x1] %v2466_v0  ;;  %1982 = vmatprep.subr.bf16.mxu1 %v2467_v1  ;;  %v291_v4 = vld [vmem:[#allocation7 + $0x90] sm:$0xff]  ;;  %v1886_v5 = vpack.c.bf16 %v290_v3, %v289_v2  ;;  %v292_v6 = vld [vmem:[#allocation7 + $0x98] sm:$0xff] }
  0x87   : > { %262 = vst [vmem:[#allocation3] sm:$0x1] %v2466_v0  ;;  %263 = vst [vmem:[#allocation3 + $0x11] sm:$0x1] %v2466_v0  ;;  %v1890_v7 = vpack.c.bf16 %v292_v6, %v291_v4  ;;  %v293_v8 = vld [vmem:[#allocation7 + $0xa0] sm:$0xff]  ;;  %v294_v9 = vld [vmem:[#allocation7 + $0xa8] sm:$0xff] }
  0x88   : > { %1887 = vmatprep.subr.bf16.mxu0 %v1886_v5  ;;  %v1894_v10 = vpack.c.bf16 %v294_v9, %v293_v8  ;;  %v2728_v11 = vld [vmem:[%s2708_s9] sm:$0xff]  ;;  %v296_v13 = vld [vmem:[#allocation7 + $0xb8] sm:$0xff]  ;;  %v298_v17 = vld [vmem:[#allocation7 + $0xc8] sm:$0xff]  ;;  %vm2468_vm0 = vmmov 0   ;;  %s1359_s21 = sshll.u32 %s2518_s19, 8  ;;  %s259_s23 = scalar_lea.vmem [#allocation12], %s1348_s25 }
  0x89   : > { %1889 = vmatpush3.bf16.msra.mxu0 %v1886_v5  ;;  %v295_v12 = vld [vmem:[#allocation7 + $0xb0] sm:$0xff]  ;;  %266 = vst [vmem:[#allocation2 + $0x1] sm:$0xff] %v2728_v11  ;;  %1568 = vmatprep.mubr.f32.mxu0 %v2728_v11  ;;  %v2733_v14 = vld [vmem:[%s2708_s9 + $0x8] sm:$0xff]  ;;  %v297_v16 = vld [vmem:[#allocation7 + $0xc0] sm:$0xff]  ;;  %s1236_s14 = sshll.u32 %s259_s23, 4  ;;  %s2838_s8 = scalar_lea.hbm %s2888_s4, %s1359_s21  ;;  %s2840_s14 = int_to_ptr.vmem [resolvable:$true] %s1236_s14 }
  0x8a   : > { %1891 = vmatprep.subr.bf16.mxu0 %v1890_v7  ;;  %267 = vst [vmem:[#allocation2 + $0x9] sm:$0xff] %v2733_v14  ;;  %v1898_v15 = vpack.c.bf16 %v296_v13, %v295_v12  ;;  %v1902_v18 = vpack.c.bf16 %v298_v17, %v297_v16  ;;  %v299_v19 = vld [vmem:[#allocation7 + $0xd0] sm:$0xff]  ;;  %v300_v20 = vld [vmem:[#allocation7 + $0xd8] sm:$0xff]  ;;  %v301_v22 = vld [vmem:[#allocation7 + $0xe0] sm:$0xff]  ;;  %1673 = vmatprep.mubr.msk.f32.mxu1 %vm2468_vm0, %v2466_v0  ;;  %s1223_s19 = scalar_lea.sflag [#allocation6], %s2702_s11  ;;  %s2384_s28 = scalar_lea.vmem %s2840_s14, 256 }
  0x8b   : > { %v1906_v21 = vpack.c.bf16 %v300_v20, %v299_v19  ;;  %v302_v23 = vld [vmem:[#allocation7 + $0xe8] sm:$0xff]  ;;  %v551_v24 = vld [vmem:[#allocation10] sm:$0xff]  ;;  %v553_v26 = vld [vmem:[#allocation10 + $0x10] sm:$0xff]  ;;  %p2385_p10 = scmp.ne.s32.totalorder %s2840_s14, %s2384_s28  ;;  %s2469_s30 = smov [#allocation12]  }
  0x8c   : > { %v552_v25 = vld [vmem:[#allocation10 + $0x8] sm:$0xff]  ;;  %v554_v28 = vld [vmem:[#allocation10 + $0x18] sm:$0xff]  ;;  %v1910_v29 = vpack.c.bf16 %v302_v23, %v301_v22  ;;  %v303_v30 = vld [vmem:[#allocation7 + $0xf0] sm:$0xff]  ;;  %s2388_s29 = sshll.u32 %s2469_s30, 4  ;;  %s2389_s29 = int_to_ptr.vmem [resolvable:$false] %s2388_s29 }
  0x8d   : > { %1893 = vmatpush3.bf16.msra.mxu0 %v1890_v7  ;;  %v2736_v27 = vpack.c.bf16 %v552_v25, %v551_v24  ;;  %v2739_v31 = vpack.c.bf16 %v554_v28, %v553_v26  ;;  %v304_v32 = vld [vmem:[#allocation7 + $0xf8] sm:$0xff]  ;;  %v555_v33 = vld [vmem:[#allocation10 + $0x20] sm:$0xff]  ;;  %v556_v34 = vld [vmem:[#allocation10 + $0x28] sm:$0xff]  ;;  %p2386_p3 = pnand %p2385_p10, %p2651_p5  ;;  %s2390_s24 = scalar_lea.vmem %s2389_s29, 512 }
  0x8e   : > { %1895 = vmatprep.subr.bf16.mxu0 %v1894_v10  ;;  %v1914_v35 = vpack.c.bf16 %v304_v32, %v303_v30  ;;  %v270_v36 = vld [vmem:[#allocation7] sm:$0xff]  ;;  %v2743_v37 = vpack.c.bf16 %v556_v34, %v555_v33  ;;  %v271_v38 = vld [vmem:[#allocation7 + $0x8] sm:$0xff]  ;;  %v557_v39 = vld [vmem:[#allocation10 + $0x30] sm:$0xff]  ;;  %p2391_p12 = scmp.lt.s32.totalorder %s2840_s14, %s2389_s29  ;;  %p2392_p1 = scmp.lt.s32.totalorder %s2390_s24, %s2384_s28 }
  0x8f   : > { %1984 = vmatpush3.bf16.msra.mxu1 %v2736_v27  ;;  %v558_v40 = vld [vmem:[#allocation10 + $0x38] sm:$0xff]  ;;  %v1918_v41 = vpack.c.bf16 %v271_v38, %v270_v36  ;;  %v272_v43 = vld [vmem:[#allocation7 + $0x10] sm:$0xff]  ;;  %v274_v47 = vld [vmem:[#allocation7 + $0x20] sm:$0xff]  ;;  %p2387_p7 = pneg %p2386_p3 }
  0x90   : > { %1985 = vmatprep.subr.bf16.mxu1 %v2467_v1  ;;  %v2747_v42 = vpack.c.bf16 %v558_v40, %v557_v39  ;;  %v273_v44 = vld [vmem:[#allocation7 + $0x18] sm:$0xff]  ;;  %v268_v46 = vld [vmem:[#allocation2] sm:$0xff]  ;;  %v275_v48 = vld [vmem:[#allocation7 + $0x28] sm:$0xff]  ;;  %p2393_p2 = por %p2392_p1, %p2391_p12 }
  0x91   : > { %1897 = vmatpush3.bf16.msra.mxu0 %v1894_v10  ;;  %v1922_v45 = vpack.c.bf16 %v273_v44, %v272_v43  ;;  %v1926_v49 = vpack.c.bf16 %v275_v48, %v274_v47  ;;  %v276_v50 = vld [vmem:[#allocation7 + $0x30] sm:$0xff]  ;;  %v277_v51 = vld [vmem:[#allocation7 + $0x38] sm:$0xff]  ;;  %v278_v53 = vld [vmem:[#allocation7 + $0x40] sm:$0xff] }
  0x92   : > { %1899 = vmatprep.subr.bf16.mxu0 %v1898_v15  ;;  %v1930_v52 = vpack.c.bf16 %v277_v51, %v276_v50  ;;  %v279_v54 = vld [vmem:[#allocation7 + $0x48] sm:$0xff]  ;;  %v280_v56 = vld [vmem:[#allocation7 + $0x50] sm:$0xff]  ;;  %v281_v57 = vld [vmem:[#allocation7 + $0x58] sm:$0xff]  ;;  %p2394_p4 = pnand %p2393_p2, %p2387_p7 }
  0x93   : > { %1987 = vmatpush3.bf16.msra.mxu1 %v2739_v31  ;;  %v1934_v55 = vpack.c.bf16 %v279_v54, %v278_v53  ;;  %v1938_v58 = vpack.c.bf16 %v281_v57, %v280_v56  ;;  %v282_v59 = vld [vmem:[#allocation7 + $0x60] sm:$0xff]  ;;  %v283_v60 = vld [vmem:[#allocation7 + $0x68] sm:$0xff]  ;;  %v284_v62 = vld [vmem:[#allocation7 + $0x70] sm:$0xff] }
  0x94   : > { %1988 = vmatprep.subr.bf16.mxu1 %v2467_v1  ;;  %v1942_v61 = vpack.c.bf16 %v283_v60, %v282_v59  ;;  %v285_v63 = vld [vmem:[#allocation7 + $0x78] sm:$0xff]  ;;  %v458_v3 = vld [vmem:[#allocation7 + $0x100] sm:$0xff]  ;;  %v459_v4 = vld [vmem:[#allocation7 + $0x108] sm:$0xff]  ;;  %v644_v60 = vlaneseq }
  0x95   : > { %1901 = vmatpush3.bf16.msra.mxu0 %v1898_v15  ;;  %v1946_v2 = vpack.c.bf16 %v285_v63, %v284_v62  ;;  %v1950_v5 = vpack.c.bf16 %v459_v4, %v458_v3  ;;  %v460_v6 = vld [vmem:[#allocation7 + $0x110] sm:$0xff]  ;;  %v461_v7 = vld [vmem:[#allocation7 + $0x118] sm:$0xff]  ;;  %v462_v12 = vld [vmem:[#allocation7 + $0x120] sm:$0xff] }
  0x96   : > { %1903 = vmatprep.subr.bf16.mxu0 %v1902_v18  ;;  %v269_v8 = vld [vmem:[#allocation2 + $0x8] sm:$0xff]  ;;  %v1954_v9 = vpack.c.bf16 %v461_v7, %v460_v6  ;;  %v463_v13 = vld [vmem:[#allocation7 + $0x128] sm:$0xff]  ;;  %v464_v16 = vld [vmem:[#allocation7 + $0x130] sm:$0xff] }
  0x97   : > { %1990 = vmatpush3.bf16.msra.mxu1 %v2743_v37  ;;  %v455_v10 = vld [vmem:[#allocation2 + $0x2] sm:$0xff]  ;;  %v1958_v15 = vpack.c.bf16 %v463_v13, %v462_v12  ;;  %v466_v19 = vld [vmem:[#allocation7 + $0x140] sm:$0xff]  ;;  %v467_v20 = vld [vmem:[#allocation7 + $0x148] sm:$0xff] }
  0x98   : > { %1991 = vmatprep.subr.bf16.mxu1 %v2467_v1  ;;  %v465_v17 = vld [vmem:[#allocation7 + $0x138] sm:$0xff]  ;;  %v468_v22 = vld [vmem:[#allocation7 + $0x150] sm:$0xff]  ;;  %v470_v25 = vld [vmem:[#allocation7 + $0x160] sm:$0xff] }
  0x99   : > { %1905 = vmatpush3.bf16.msra.mxu0 %v1902_v18  ;;  %v1962_v18 = vpack.c.bf16 %v465_v17, %v464_v16  ;;  %v469_v23 = vld [vmem:[#allocation7 + $0x158] sm:$0xff]  ;;  %v471_v26 = vld [vmem:[#allocation7 + $0x168] sm:$0xff]  ;;  %v559_v34 = vld [vmem:[#allocation10 + $0x40] sm:$0xff] }
  0x9a   : > { %1907 = vmatprep.subr.bf16.mxu0 %v1906_v21  ;;  %v1970_v24 = vpack.c.bf16 %v469_v23, %v468_v22  ;;  %v1974_v28 = vpack.c.bf16 %v471_v26, %v470_v25  ;;  %v473_v30 = vld [vmem:[#allocation7 + $0x178] sm:$0xff]  ;;  %v561_v38 = vld [vmem:[#allocation10 + $0x50] sm:$0xff]  ;;  %v564_v43 = vld [vmem:[#allocation10 + $0x68] sm:$0xff] }
  0x9b   : > { %1993 = vmatpush3.bf16.msra.mxu1 %v2747_v42  ;;  %v456_v33 = vld [vmem:[#allocation2 + $0xa] sm:$0xff]  ;;  %v767_v17 = vld [vmem:[#allocation9 + $0x90] sm:$0xff] }
  0x9c   : > { %1994 = vmatprep.subr.bf16.mxu1 %v2467_v1  ;;  %v562_v39 = vld [vmem:[#allocation10 + $0x58] sm:$0xff]  ;;  %v765_v57 = vld [vmem:[#allocation9 + $0x80] sm:$0xff]  ;;  %v771_v23 = vld [vmem:[#allocation9 + $0xb0] sm:$0xff] }
  0x9d   : > { %1909 = vmatpush3.bf16.msra.mxu0 %v1906_v21  ;;  %v1966_v21 = vpack.c.bf16 %v467_v20, %v466_v19  ;;  %v2768_v40 = vpack.c.bf16 %v562_v39, %v561_v38  ;;  %v769_v20 = vld [vmem:[#allocation9 + $0xa0] sm:$0xff]  ;;  %v779_v39 = vld [vmem:[#allocation9 + $0xf0] sm:$0xff] }
  0x9e   : > { %1911 = vmatprep.subr.bf16.mxu0 %v1910_v29  ;;  %v773_v26 = vld [vmem:[#allocation9 + $0xc0] sm:$0xff] }
  0xa1   : > { %1913 = vmatpush3.bf16.msra.mxu0 %v1910_v29  ;;  %v472_v29 = vld [vmem:[#allocation7 + $0x170] sm:$0xff] }
  0xa2   : > { %1915 = vmatprep.subr.bf16.mxu0 %v1914_v35  ;;  %v1978_v32 = vpack.c.bf16 %v473_v30, %v472_v29  ;;  %v775_v30 = vld [vmem:[#allocation9 + $0xd0] sm:$0xff] }
  0xa5   : > { %1917 = vmatpush3.bf16.msra.mxu0 %v1914_v35  ;;  %v560_v35 = vld [vmem:[#allocation10 + $0x48] sm:$0xff] }
  0xa6   : > { %1919 = vmatprep.subr.bf16.mxu0 %v1918_v41  ;;  %v2762_v36 = vpack.c.bf16 %v560_v35, %v559_v34  ;;  %v777_v34 = vld [vmem:[#allocation9 + $0xe0] sm:$0xff]  ;;  %v778_v35 = vld [vmem:[#allocation9 + $0xe8] sm:$0xff] }
  0xa7   : > { %v2054_v38 = vpack.c.bf16 %v778_v35, %v777_v34 }
  0xa8   : > { %1569 = vmatmul.mubr.f32.vlgmr.msra.gmra.mrb[0].mxu0 %v2733_v14  ;;  %1996 = vmatpush3.bf16.msra.mxu1 %v2762_v36 }
  0xa9   : > { %1921 = vmatpush3.bf16.msra.mxu0 %v1918_v41  ;;  %1603 = vmatprep.mubr.f32.mxu0 %v268_v46  ;;  %v563_v41 = vld [vmem:[#allocation10 + $0x60] sm:$0xff]  ;;  %v566_v46 = vld [vmem:[#allocation10 + $0x78] sm:$0xff] }
  0xaa   : > { %1923 = vmatprep.subr.bf16.mxu0 %v1922_v45  ;;  %1997 = vmatprep.subr.bf16.mxu1 %v2467_v1  ;;  %v2774_v44 = vpack.c.bf16 %v564_v43, %v563_v41  ;;  %v780_v41 = vld [vmem:[#allocation9 + $0xf8] sm:$0xff] }
  0xab   : > { %v2058_v43 = vpack.c.bf16 %v780_v41, %v779_v39  ;;  %v941_v39 = vld [vmem:[#allocation9 + $0x138] sm:$0xff] }
  0xac   : > { %1999 = vmatpush3.bf16.msra.mxu1 %v2768_v40 }
  0xad   : > { %1925 = vmatpush3.bf16.msra.mxu0 %v1922_v45  ;;  %2000 = vmatprep.subr.bf16.mxu1 %v2467_v1  ;;  %v565_v45 = vld [vmem:[#allocation10 + $0x70] sm:$0xff] }
  0xae   : > { %1927 = vmatprep.subr.bf16.mxu0 %v1926_v49  ;;  %v2780_v47 = vpack.c.bf16 %v566_v46, %v565_v45  ;;  %v746_v45 = vld [vmem:[#allocation9] sm:$0xff]  ;;  %v747_v46 = vld [vmem:[#allocation9 + $0x8] sm:$0xff] }
  0xb0   : > { %2002 = vmatpush3.bf16.msra.mxu1 %v2774_v44 }
  0xb1   : > { %1929 = vmatpush3.bf16.msra.mxu0 %v1926_v49  ;;  %2003 = vmatprep.subr.bf16.mxu1 %v2467_v1 }
  0xb2   : > { %1931 = vmatprep.subr.bf16.mxu0 %v1930_v52 }
  0xb4   : > { %2005 = vmatpush3.bf16.msra.mxu1 %v2780_v47 }
  0xb5   : > { %1933 = vmatpush3.bf16.msra.mxu0 %v1930_v52  ;;  %2006 = vmatprep.subr.bf16.mxu1 %v2467_v1 }
  0xb6   : > { %1935 = vmatprep.subr.bf16.mxu0 %v1934_v55 }
  0xb9   : > { %1937 = vmatpush3.bf16.msra.mxu0 %v1934_v55 }
  0xba   : > { %1939 = vmatprep.subr.bf16.mxu0 %v1938_v58 }
  0xbd   : > { %1941 = vmatpush3.bf16.msra.mxu0 %v1938_v58  ;;  %v766_v58 = vld [vmem:[#allocation9 + $0x88] sm:$0xff] }
  0xbe   : > { %1943 = vmatprep.subr.bf16.mxu0 %v1942_v61  ;;  %v2030_v59 = vpack.c.bf16 %v766_v58, %v765_v57  ;;  %v749_v57 = vld [vmem:[#allocation9 + $0x18] sm:$0xff] }
  0xc1   : > { %1945 = vmatpush3.bf16.msra.mxu0 %v1942_v61  ;;  %v645_v61 = vshrl.u32 %v644_v60, 7 }
  0xc2   : > { %1947 = vmatprep.subr.bf16.mxu0 %v1946_v2 }
  0xc3   : > { %v2807_v62 = vsub.s32 0, %v645_v61 }
  0xc5   : > { %1949 = vmatpush3.bf16.msra.mxu0 %v1946_v2 }
  0xc6   : > { %1951 = vmatprep.subr.bf16.mxu0 %v1950_v5 }
  0xc8   : > { %1604 = vmatmul.mubr.f32.vlgmr.msra.gmra.mrb[0].mxu0 %v269_v8 }
  0xc9   : > { %1953 = vmatpush3.bf16.msra.mxu0 %v1950_v5  ;;  %1638 = vmatprep.mubr.f32.mxu0 %v455_v10 }
  0xca   : > { %1955 = vmatprep.subr.bf16.mxu0 %v1954_v9 }
  0xcd   : > { %1957 = vmatpush3.bf16.msra.mxu0 %v1954_v9 }
  0xce   : > { %1959 = vmatprep.subr.bf16.mxu0 %v1958_v15 }
  0xd1   : > { %1961 = vmatpush3.bf16.msra.mxu0 %v1958_v15 }
  0xd2   : > { %1963 = vmatprep.subr.bf16.mxu0 %v1962_v18 }
  0xd5   : > { %1965 = vmatpush3.bf16.msra.mxu0 %v1962_v18  ;;  %v768_v18 = vld [vmem:[#allocation9 + $0x98] sm:$0xff] }
  0xd6   : > { %1967 = vmatprep.subr.bf16.mxu0 %v1966_v21  ;;  %v2034_v19 = vpack.c.bf16 %v768_v18, %v767_v17  ;;  %v758_v17 = vld [vmem:[#allocation9 + $0x60] sm:$0xff]  ;;  %v759_v18 = vld [vmem:[#allocation9 + $0x68] sm:$0xff] }
  0xd9   : > { %1969 = vmatpush3.bf16.msra.mxu0 %v1966_v21  ;;  %v770_v21 = vld [vmem:[#allocation9 + $0xa8] sm:$0xff] }
  0xda   : > { %1971 = vmatprep.subr.bf16.mxu0 %v1970_v24  ;;  %v2038_v22 = vpack.c.bf16 %v770_v21, %v769_v20  ;;  %v760_v20 = vld [vmem:[#allocation9 + $0x70] sm:$0xff]  ;;  %v761_v21 = vld [vmem:[#allocation9 + $0x78] sm:$0xff] }
  0xdd   : > { %1973 = vmatpush3.bf16.msra.mxu0 %v1970_v24  ;;  %v772_v24 = vld [vmem:[#allocation9 + $0xb8] sm:$0xff] }
  0xde   : > { %1975 = vmatprep.subr.bf16.mxu0 %v1974_v28  ;;  %v2042_v25 = vpack.c.bf16 %v772_v24, %v771_v23  ;;  %v934_v23 = vld [vmem:[#allocation9 + $0x100] sm:$0xff]  ;;  %v935_v24 = vld [vmem:[#allocation9 + $0x108] sm:$0xff] }
  0xe1   : > { %1977 = vmatpush3.bf16.msra.mxu0 %v1974_v28  ;;  %v774_v28 = vld [vmem:[#allocation9 + $0xc8] sm:$0xff] }
  0xe2   : > { %1979 = vmatprep.subr.bf16.mxu0 %v1978_v32  ;;  %v2046_v29 = vpack.c.bf16 %v774_v28, %v773_v26  ;;  %v936_v26 = vld [vmem:[#allocation9 + $0x110] sm:$0xff]  ;;  %v937_v28 = vld [vmem:[#allocation9 + $0x118] sm:$0xff] }
  0xe5   : > { %1981 = vmatpush3.bf16.msra.mxu0 %v1978_v32  ;;  %v776_v32 = vld [vmem:[#allocation9 + $0xd8] sm:$0xff] }
  0xe6   : > { %2126 = vmatprep.subr.bf16.mxu0 %v2467_v1 }
  0xe8   : > { %1639 = vmatmul.mubr.f32.vlgmr.msra.gmra.mrb[0].mxu0 %v456_v33  ;;  %v2050_v33 = vpack.c.bf16 %v776_v32, %v775_v30  ;;  %v938_v32 = vld [vmem:[#allocation9 + $0x120] sm:$0xff] }
  0xe9   : > { %2128 = vmatpush3.bf16.msra.mxu0 %v2736_v27  ;;  %1848 = vmatprep.mubr.msk.f32.mxu0 %vm2468_vm0, %v2466_v0 }
  0xea   : > { %2129 = vmatprep.subr.bf16.mxu0 %v2467_v1 }
  0xed   : > { %2131 = vmatpush3.bf16.msra.mxu0 %v2739_v31 }
  0xee   : > { %2132 = vmatprep.subr.bf16.mxu0 %v2467_v1 }
  0xf1   : > { %2134 = vmatpush3.bf16.msra.mxu0 %v2743_v37 }
  0xf2   : > { %2135 = vmatprep.subr.bf16.mxu0 %v2467_v1 }
  0xf5   : > { %2137 = vmatpush3.bf16.msra.mxu0 %v2747_v42 }
  0xf6   : > { %2138 = vmatprep.subr.bf16.mxu0 %v2467_v1 }
  0xf9   : > { %2140 = vmatpush3.bf16.msra.mxu0 %v2762_v36 }
  0xfa   : > { %2141 = vmatprep.subr.bf16.mxu0 %v2467_v1 }
  0xfd   : > { %2143 = vmatpush3.bf16.msra.mxu0 %v2768_v40 }
  0xfe   : > { %2144 = vmatprep.subr.bf16.mxu0 %v2467_v1 }
 0x101   : > { %2146 = vmatpush3.bf16.msra.mxu0 %v2774_v44 }
 0x102   : > { %2147 = vmatprep.subr.bf16.mxu0 %v2467_v1 }
 0x105   : > { %2149 = vmatpush3.bf16.msra.mxu0 %v2780_v47 }
 0x106   : > { %2150 = vmatprep.subr.bf16.mxu0 %v2467_v1 }
 0x1bb   : > { %v1640_v48 = vpop.f32.mrb[0].mxu0 }
 0x1bc   : > { %v540_v49 = vpop.f32.mrb[1].mxu0 }
 0x1bd   : > { %v567_v50 = vadd.f32 %v1640_v48, %v540_v49 }
 0x1bf   : > { %v568_v51 = vrot.slane %v567_v50, 4 }
 0x1c1   : > { %v569_v52 = vadd.f32 %v568_v51, %v567_v50 }
 0x1c3   : > { %v570_v53 = vrot.slane %v569_v52, 2 }
 0x1c5   : > { %v571_v54 = vadd.f32 %v570_v53, %v569_v52 }
 0x1c7   : > { %v572_v55 = vrot.slane %v571_v54, 1 }
 0x1c9   : > { %v573_v56 = vadd.f32 %v572_v55, %v571_v54 }
 0x1cb   : > { %1674 = vmatmul.mubr.f32.vlgmr.msra.gmra.mrb[0].mxu1 %v573_v56  ;;  %v748_v56 = vld [vmem:[#allocation9 + $0x10] sm:$0xff] }
 0x1cc   : > { %2008 = vmatpush3.bf16.msra.mxu1 %v2736_v27  ;;  %1708 = vmatprep.mubr.msk.f32.mxu1 %vm2468_vm0, %v2466_v0 }
 0x1cd   : > { %2009 = vmatprep.subr.bf16.mxu1 %v2467_v1 }
 0x1d0   : > { %2011 = vmatpush3.bf16.msra.mxu1 %v2739_v31 }
 0x1d1   : > { %2012 = vmatprep.subr.bf16.mxu1 %v2467_v1 }
 0x1d4   : > { %2014 = vmatpush3.bf16.msra.mxu1 %v2743_v37 }
 0x1d5   : > { %2015 = vmatprep.subr.bf16.mxu1 %v2467_v1 }
 0x1d8   : > { %2017 = vmatpush3.bf16.msra.mxu1 %v2747_v42 }
 0x1d9   : > { %2018 = vmatprep.subr.bf16.mxu1 %v2467_v1 }
 0x1dc   : > { %2020 = vmatpush3.bf16.msra.mxu1 %v2762_v36 }
 0x1dd   : > { %2021 = vmatprep.subr.bf16.mxu1 %v2467_v1 }
 0x1e0   : > { %2023 = vmatpush3.bf16.msra.mxu1 %v2768_v40 }
 0x1e1   : > { %2024 = vmatprep.subr.bf16.mxu1 %v2467_v1 }
 0x1e4   : > { %2026 = vmatpush3.bf16.msra.mxu1 %v2774_v44 }
 0x1e5   : > { %2027 = vmatprep.subr.bf16.mxu1 %v2467_v1 }
 0x1e8   : > { %2029 = vmatpush3.bf16.msra.mxu1 %v2780_v47 }
 0x1e9   : > { %2031 = vmatprep.subr.bf16.mxu1 %v2030_v59 }
 0x29e   : > { %v640_v63 = vpop.f32.mrb[0].mxu1 }
 0x29f   : > { %v647_v2 = vrot.slane %v640_v63, %v2807_v62  ;;  %v1675_v3 = vpop.f32.mrb[1].mxu1  ;;  %v2066_v63 = vpack.c.bf16 %v749_v57, %v748_v56 }
 0x2a0   : > { %v751_v3 = vld [vmem:[#allocation9 + $0x28] sm:$0xff] }
 0x2a1   : > { %v648_v4 = vsub.f32 %v540_v49, %v647_v2  ;;  %v649_v5 = vsub.f32 %v1640_v48, %v647_v2  ;;  %v2062_v48 = vpack.c.bf16 %v747_v46, %v746_v45  ;;  %v750_v2 = vld [vmem:[#allocation9 + $0x20] sm:$0xff]  ;;  %v943_v45 = vld [vmem:[#allocation9 + $0x148] sm:$0xff] }
 0x2a3   : > { %v650_v6 = vmul.f32 %v648_v4, %v648_v4  ;;  %v651_v7 = vmul.f32 %v649_v5, %v649_v5 }
 0x2a5   : > { %v652_v8 = vadd.f32 %v651_v7, %v650_v6  ;;  %v2070_v6 = vpack.c.bf16 %v751_v3, %v750_v2 }
 0x2a7   : > { %v653_v9 = vrot.slane %v652_v8, 4 }
 0x2a9   : > { %v654_v10 = vadd.f32 %v653_v9, %v652_v8  ;;  %v754_v9 = vld [vmem:[#allocation9 + $0x40] sm:$0xff] }
 0x2ab   : > { %v655_v12 = vrot.slane %v654_v10, 2 }
 0x2ad   : > { %v656_v13 = vadd.f32 %v655_v12, %v654_v10  ;;  %v755_v10 = vld [vmem:[#allocation9 + $0x48] sm:$0xff] }
 0x2ae   : > { %v2078_v12 = vpack.c.bf16 %v755_v10, %v754_v9 }
 0x2af   : > { %v657_v15 = vrot.slane %v656_v13, 1 }
 0x2b1   : > { %v658_v16 = vadd.f32 %v657_v15, %v656_v13  ;;  %v756_v13 = vld [vmem:[#allocation9 + $0x50] sm:$0xff]  ;;  %v757_v15 = vld [vmem:[#allocation9 + $0x58] sm:$0xff] }
 0x2b3   : > { %1709 = vmatmul.mubr.f32.vlgmr.msra.gmra.mrb[2].mxu1 %v658_v16  ;;  %v2082_v16 = vpack.c.bf16 %v757_v15, %v756_v13 }
 0x2b4   : > { %2033 = vmatpush3.bf16.msra.mxu1 %v2030_v59 }
 0x2b5   : > { %2035 = vmatprep.subr.bf16.mxu1 %v2034_v19 }
 0x2b8   : > { %2037 = vmatpush3.bf16.msra.mxu1 %v2034_v19  ;;  %v2086_v19 = vpack.c.bf16 %v759_v18, %v758_v17 }
 0x2b9   : > { %2039 = vmatprep.subr.bf16.mxu1 %v2038_v22 }
 0x2bc   : > { %2041 = vmatpush3.bf16.msra.mxu1 %v2038_v22  ;;  %v2090_v22 = vpack.c.bf16 %v761_v21, %v760_v20 }
 0x2bd   : > { %2043 = vmatprep.subr.bf16.mxu1 %v2042_v25 }
 0x2c0   : > { %2045 = vmatpush3.bf16.msra.mxu1 %v2042_v25  ;;  %v2094_v25 = vpack.c.bf16 %v935_v24, %v934_v23 }
 0x2c1   : > { %2047 = vmatprep.subr.bf16.mxu1 %v2046_v29 }
 0x2c4   : > { %2049 = vmatpush3.bf16.msra.mxu1 %v2046_v29  ;;  %v2098_v29 = vpack.c.bf16 %v937_v28, %v936_v26 }
 0x2c5   : > { %2051 = vmatprep.subr.bf16.mxu1 %v2050_v33 }
 0x2c8   : > { %2053 = vmatpush3.bf16.msra.mxu1 %v2050_v33  ;;  %v939_v33 = vld [vmem:[#allocation9 + $0x128] sm:$0xff] }
 0x2c9   : > { %2055 = vmatprep.subr.bf16.mxu1 %v2054_v38  ;;  %v2102_v35 = vpack.c.bf16 %v939_v33, %v938_v32 }
 0x2cc   : > { %2057 = vmatpush3.bf16.msra.mxu1 %v2054_v38  ;;  %v940_v38 = vld [vmem:[#allocation9 + $0x130] sm:$0xff] }
 0x2cd   : > { %2059 = vmatprep.subr.bf16.mxu1 %v2058_v43  ;;  %v2106_v41 = vpack.c.bf16 %v941_v39, %v940_v38 }
 0x2d0   : > { %2061 = vmatpush3.bf16.msra.mxu1 %v2058_v43  ;;  %v942_v43 = vld [vmem:[#allocation9 + $0x140] sm:$0xff] }
 0x2d1   : > { %2063 = vmatprep.subr.bf16.mxu1 %v2062_v48  ;;  %v2110_v46 = vpack.c.bf16 %v943_v45, %v942_v43 }
 0x386   : > { %v725_v49 = vpop.f32.mrb[2].mxu1 }
 0x387   : > { %v726_v50 = vadd.f32 1e-05, %v725_v49  ;;  %v1710_v51 = vpop.f32.mrb[3].mxu1  ;;  %v945_v49 = vld [vmem:[#allocation9 + $0x158] sm:$0xff] }
 0x388   : > { %v946_v51 = vld [vmem:[#allocation9 + $0x160] sm:$0xff] }
 0x389   : > { %2266 = vrsqrt.f32 %v726_v50 }
 0x393   : > { %v2267_v52 = vpop.eup %2266 }
 0x394   : > { %v733_v53 = vrot.slane %v2267_v52, %v2807_v62  ;;  %v947_v52 = vld [vmem:[#allocation9 + $0x168] sm:$0xff] }
 0x396   : > { %v734_v54 = vmul.f32 %v733_v53, %v648_v4  ;;  %v735_v55 = vmul.f32 %v733_v53, %v649_v5  ;;  %v752_v4 = vld [vmem:[#allocation9 + $0x30] sm:$0xff]  ;;  %v753_v5 = vld [vmem:[#allocation9 + $0x38] sm:$0xff]  ;;  %v2118_v53 = vpack.c.bf16 %v947_v52, %v946_v51 }
 0x397   : > { %v2074_v8 = vpack.c.bf16 %v753_v5, %v752_v4 }
 0x398   : > { %vm736_vm1 = vcmp.gt.f32.partialorder %v734_v54, 0.0  ;;  %vm737_vm2 = vcmp.gt.f32.partialorder %v735_v55, 0.0  ;;  %v738_v58 = vmul.f32 0.2, %v734_v54  ;;  %v739_v59 = vmul.f32 0.2, %v735_v55 }
 0x39a   : > { %v740_v60 = vsel %vm736_vm1, %v734_v54, %v738_v58  ;;  %v741_v61 = vsel %vm737_vm2, %v735_v55, %v739_v59  ;;  %v948_v54 = vld [vmem:[#allocation9 + $0x170] sm:$0xff]  ;;  %v949_v55 = vld [vmem:[#allocation9 + $0x178] sm:$0xff] }
 0x39b   : > { %742 = vst [vmem:[#allocation3 + $0x1] sm:$0xff] %v740_v60  ;;  %743 = vst [vmem:[#allocation3 + $0x9] sm:$0xff] %v741_v61  ;;  %1743 = vmatprep.mubr.f32.mxu1 %v740_v60  ;;  %v2122_v56 = vpack.c.bf16 %v949_v55, %v948_v54 }
 0x39c   : > { %1744 = vmatmul.mubr.f32.vlgmr.msra.gmra.mrb[4].mxu1 %v741_v61 }
 0x39d   : > { %2065 = vmatpush3.bf16.msra.mxu1 %v2062_v48  ;;  %v944_v48 = vld [vmem:[#allocation9 + $0x150] sm:$0xff] }
 0x39e   : > { %2067 = vmatprep.subr.bf16.mxu1 %v2066_v63  ;;  %v2114_v50 = vpack.c.bf16 %v945_v49, %v944_v48 }
 0x3a1   : > { %2069 = vmatpush3.bf16.msra.mxu1 %v2066_v63 }
 0x3a2   : > { %v744_v7 = vld [vmem:[#allocation3] sm:$0xff]  ;;  %2071 = vmatprep.subr.bf16.mxu1 %v2070_v6  ;;  %v745_v30 = vld [vmem:[#allocation3 + $0x8] sm:$0xff] }
 0x3a3   : > { %1778 = vmatprep.mubr.f32.mxu1 %v744_v7  ;;  %v931_v34 = vld [vmem:[#allocation3 + $0x2] sm:$0xff]  ;;  %v932_v57 = vld [vmem:[#allocation3 + $0xa] sm:$0xff] }
 0x3a5   : > { %2073 = vmatpush3.bf16.msra.mxu1 %v2070_v6 }
 0x3a6   : > { %2075 = vmatprep.subr.bf16.mxu1 %v2074_v8 }
 0x3a9   : > { %2077 = vmatpush3.bf16.msra.mxu1 %v2074_v8 }
 0x3aa   : > { %2079 = vmatprep.subr.bf16.mxu1 %v2078_v12 }
 0x3ad   : > { %2081 = vmatpush3.bf16.msra.mxu1 %v2078_v12 }
 0x3ae   : > { %2083 = vmatprep.subr.bf16.mxu1 %v2082_v16 }
 0x3b1   : > { %2085 = vmatpush3.bf16.msra.mxu1 %v2082_v16 }
 0x3b2   : > { %2087 = vmatprep.subr.bf16.mxu1 %v2086_v19 }
 0x3b5   : > { %2089 = vmatpush3.bf16.msra.mxu1 %v2086_v19 }
 0x3b6   : > { %2091 = vmatprep.subr.bf16.mxu1 %v2090_v22 }
 0x3b9   : > { %2093 = vmatpush3.bf16.msra.mxu1 %v2090_v22 }
 0x3ba   : > { %2095 = vmatprep.subr.bf16.mxu1 %v2094_v25 }
 0x3bc   : > { %1779 = vmatmul.mubr.f32.vlgmr.msra.gmra.mrb[4].mxu1 %v745_v30 }
 0x3bd   : > { %2097 = vmatpush3.bf16.msra.mxu1 %v2094_v25  ;;  %1813 = vmatprep.mubr.f32.mxu1 %v931_v34 }
 0x3be   : > { %2099 = vmatprep.subr.bf16.mxu1 %v2098_v29 }
 0x3c1   : > { %2101 = vmatpush3.bf16.msra.mxu1 %v2098_v29 }
 0x3c2   : > { %2103 = vmatprep.subr.bf16.mxu1 %v2102_v35 }
 0x3c5   : > { %2105 = vmatpush3.bf16.msra.mxu1 %v2102_v35 }
 0x3c6   : > { %2107 = vmatprep.subr.bf16.mxu1 %v2106_v41 }
 0x3c9   : > { %2109 = vmatpush3.bf16.msra.mxu1 %v2106_v41 }
 0x3ca   : > { %2111 = vmatprep.subr.bf16.mxu1 %v2110_v46 }
 0x3cd   : > { %2113 = vmatpush3.bf16.msra.mxu1 %v2110_v46 }
 0x3ce   : > { %2115 = vmatprep.subr.bf16.mxu1 %v2114_v50 }
 0x3d1   : > { %2117 = vmatpush3.bf16.msra.mxu1 %v2114_v50 }
 0x3d2   : > { %2119 = vmatprep.subr.bf16.mxu1 %v2118_v53 }
 0x3d5   : > { %2121 = vmatpush3.bf16.msra.mxu1 %v2118_v53 }
 0x3d6   : > { %2123 = vmatprep.subr.bf16.mxu1 %v2122_v56 }
 0x3d9   : > { %2125 = vmatpush3.bf16.msra.mxu1 %v2122_v56 }
 0x3dc   : > { %1814 = vmatmul.mubr.f32.vlgmr.msra.gmra.mrb[4].mxu1 %v932_v57 }
 0x4af   : > { %v1815_v58 = vpop.f32.mrb[4].mxu1 }
 0x4b0   : > { %v1016_v59 = vpop.f32.mrb[5].mxu1 }
 0x4b1   : > { %v1043_v60 = vadd.f32 %v1815_v58, %v1016_v59 }
 0x4b3   : > { %v1044_v61 = vrot.slane %v1043_v60, 4 }
 0x4b5   : > { %v1045_v63 = vadd.f32 %v1044_v61, %v1043_v60 }
 0x4b7   : > { %v1046_v2 = vrot.slane %v1045_v63, 2 }
 0x4b9   : > { %v1047_v3 = vadd.f32 %v1046_v2, %v1045_v63 }
 0x4bb   : > { %v1048_v6 = vrot.slane %v1047_v3, 1 }
 0x4bd   : > { %v1049_v4 = vadd.f32 %v1048_v6, %v1047_v3 }
 0x4bf   : > { %1849 = vmatmul.mubr.f32.vlgmr.msra.gmra.mrb[2].mxu0 %v1049_v4 }
 0x4c0   : > { %2152 = vmatpush3.bf16.msra.mxu0 %v2736_v27  ;;  %1883 = vmatprep.mubr.msk.f32.mxu0 %vm2468_vm0, %v2466_v0 }
 0x4c1   : > { %2153 = vmatprep.subr.bf16.mxu0 %v2467_v1 }
 0x4c4   : > { %2155 = vmatpush3.bf16.msra.mxu0 %v2739_v31 }
 0x4c5   : > { %2156 = vmatprep.subr.bf16.mxu0 %v2467_v1 }
 0x4c8   : > { %2158 = vmatpush3.bf16.msra.mxu0 %v2743_v37 }
 0x4c9   : > { %2159 = vmatprep.subr.bf16.mxu0 %v2467_v1 }
 0x4cc   : > { %2161 = vmatpush3.bf16.msra.mxu0 %v2747_v42 }
 0x4cd   : > { %2162 = vmatprep.subr.bf16.mxu0 %v2467_v1 }
 0x4d0   : > { %2164 = vmatpush3.bf16.msra.mxu0 %v2762_v36 }
 0x4d1   : > { %2165 = vmatprep.subr.bf16.mxu0 %v2467_v1 }
 0x4d4   : > { %2167 = vmatpush3.bf16.msra.mxu0 %v2768_v40 }
 0x4d5   : > { %2168 = vmatprep.subr.bf16.mxu0 %v2467_v1 }
 0x4d8   : > { %2170 = vmatpush3.bf16.msra.mxu0 %v2774_v44 }
 0x4d9   : > { %2171 = vmatprep.subr.bf16.mxu0 %v2467_v1 }
 0x4dc   : > { %2173 = vmatpush3.bf16.msra.mxu0 %v2780_v47 }
 0x592   : > { %v1116_v0 = vpop.f32.mrb[2].mxu0 }
 0x593   : > { %v1123_v27 = vrot.slane %v1116_v0, %v2807_v62  ;;  %v1850_v31 = vpop.f32.mrb[3].mxu0 }
 0x595   : > { %v1124_v37 = vsub.f32 %v1016_v59, %v1123_v27  ;;  %v1125_v42 = vsub.f32 %v1815_v58, %v1123_v27 }
 0x597   : > { %v1126_v5 = vmul.f32 %v1124_v37, %v1124_v37  ;;  %v1127_v36 = vmul.f32 %v1125_v42, %v1125_v42 }
 0x599   : > { %v1128_v7 = vadd.f32 %v1127_v36, %v1126_v5 }
 0x59b   : > { %v1129_v8 = vrot.slane %v1128_v7, 4 }
 0x59d   : > { %v1130_v40 = vadd.f32 %v1129_v8, %v1128_v7 }
 0x59f   : > { %v1131_v9 = vrot.slane %v1130_v40, 2 }
 0x5a1   : > { %v1132_v10 = vadd.f32 %v1131_v9, %v1130_v40 }
 0x5a3   : > { %v1133_v44 = vrot.slane %v1132_v10, 1 }
 0x5a5   : > { %v1134_v12 = vadd.f32 %v1133_v44, %v1132_v10 }
 0x5a7   : > { %1884 = vmatmul.mubr.f32.vlgmr.msra.gmra.mrb[4].mxu0 %v1134_v12 }
 0x67a   : > { %v1201_v1 = vpop.f32.mrb[4].mxu0 }
 0x67b   : > { %v1202_v47 = vadd.f32 1e-05, %v1201_v1  ;;  %v1885_v13 = vpop.f32.mrb[5].mxu0 }
 0x67d   : > { %2268 = vrsqrt.f32 %v1202_v47 }
 0x687   : > { %v2269_v15 = vpop.eup %2268 }
 0x688   : > { %v1209_v16 = vrot.slane %v2269_v15, %v2807_v62 }
 0x68a   : > { %v1210_v17 = vmul.f32 %v1209_v16, %v1124_v37  ;;  %v1211_v18 = vmul.f32 %v1209_v16, %v1125_v42 }
 0x68c   : > { %v1212_v19 = vadd.f32 %v1210_v17, %v2728_v11  ;;  %v1213_v20 = vadd.f32 %v1211_v18, %v2733_v14 }
 0x68e   : > { %v1216_v21 = vmul.f32 0.2, %v1212_v19  ;;  %v1217_v22 = vmul.f32 0.2, %v1213_v20  ;;  %vm1214_vm3 = vcmp.gt.f32.partialorder %v1212_v19, 0.0  ;;  %vm1215_vm4 = vcmp.gt.f32.partialorder %v1213_v20, 0.0 }
 0x690   : > { %v1218_v62 = vsel %vm1214_vm3, %v1212_v19, %v1216_v21  ;;  %v1219_v23 = vsel %vm1215_vm4, %v1213_v20, %v1217_v22 }
 0x691   : > { %1220 = vst [vmem:[%s259_s23] sm:$0xff] %v1218_v62  ;;  %1221 = vst [vmem:[%s259_s23 + $0x8] sm:$0xff] %v1219_v23 }
 0x692   : > { %2397 = shalt.err (!%p2394_p4)
}
 0x693   : > { %s2398_s5 = scalar_lea.hbm %s2838_s8, 256  ;;  %s2402_s25 = scalar_lea.hbm %s2888_s4, 512 }
 0x694   : > { %p2399_p9 = scmp.ne.s32.totalorder %s2838_s8, %s2398_s5  ;;  %p2403_p8 = scmp.lt.u32.totalorder %s2838_s8, %s2888_s4 }
 0x695   : > { %p2404_p13 = scmp.lt.u32.totalorder %s2402_s25, %s2398_s5  ;;  %p2406_p10 = scmp.lt.u32.totalorder %s2398_s5, %s2838_s8 }
 0x696   : > { %p2400_p0 = pnand %p2399_p9, %p2651_p5 }
 0x697   : > { %p2405_p6 = por %p2404_p13, %p2403_p8 }
 0x698   : > { %p2401_p11 = pneg %p2400_p0 }
 0x699   : > { %p2407_p3 = por %p2406_p10, %p2405_p6 }
 0x69b   : > { %p2408_p7 = pnand %p2407_p3, %p2401_p11 }
 0x69d   : > { %2411 = shalt.err (!%p2408_p7)
}
 0x69e   : > { %s2470_s21 = smov 128   ;;  %s2471_s23 = smov 8  }
 0x69f   : > { %2196 = dma.vmem_to_hbm [thread:$0]  (%p2651_p5), %s2840_s14, 256, %s2838_s8, %s1223_s19, %s2470_s21, %s2470_s21, %s2471_s23  }
 0x6a0 PF: > { %s1251_s20 = sand.u32 1, %s2446_s15   ;;  %p2906_p12 = scmp.ne.s32.totalorder %s2893_s22, 0 }
 0x6a1   : > { %p2907_p1 = scmp.ge.s32.totalorder %s2458_s18, 2  ;;  %s1252_s6 = scalar_lea.sflag [#allocation6], %s1251_s20 }
 0x6a3   : > { %p2213_p2 = pnand %p2907_p1, %p2906_p12 }
 0x6a5   : > { %2441 = dma.done.wait (!%p2213_p2), %s1252_s6, 256  }
 0x6a6   : > { %2443 = vsyncadd (!%p2213_p2), %s1252_s6, 4294967040  ;;  %p19_p4 = scmp.ge.s32.totalorder %s2637_s10, 4   ;;  %s2908_s15 = smov %s2450_s16 }
 0x6a7   : > { %s2909_s16 = smov %s2454_s17  ;;  %s2910_s17 = smov %s2647_s12 }
 0x6a8   : > { %s2911_s18 = smov %s2637_s10  ;;  %21 = sbr.rel (!%p19_p4) target bundleno = 7 (0x7), region = 97 }
 0x6af   :  { %1257 = vsyncpa [#allocation5], 1 }
 0x6b0   :  { %1259 = vsyncpa [#allocation5 + $0x1], 1 }
 0x6b1   :  { %1260 = vsyncpa [#allocation8], 1 }
 0x6b2   :  { %1261 = vsyncpa [#allocation11], 1 }
 0x6b3   :  { %1262 = vsyncpa [#allocation6], 1 }
 0x6b4   :  { %1264 = vsyncpa [#allocation6 + $0x1], 1 }

</bundles_post_ra>
